<compile_context>
chip_gen: v5e
topology: v5e:2x2
jax: 0.10.0
libtpu: 0.0.40
codegen_flags: <defaults>
</compile_context>

<pallas_src>
import jax
import jax.numpy as jnp
from jax.experimental import pallas as pl
from jax.experimental.pallas import tpu as pltpu

LATENT_DIM = 100
NUM_CLASSES = 10

NOISE_PAD = 128            # lane-aligned noise feature dim (100 -> 128)
CLS_PAD = 128              # lane-aligned class dim for the one-hot / table
H1, H2, H3 = 128, 256, 512
OUT_PAD = 128              # lane-dense output slab (real classes = 10)

NEG_BIG = -1.0e30          # mask value for padded logit columns


def generator_kernel(labels_ref, noise_ref,
                     t1_ref, w1n_ref,
                     w2_ref, b2_ref,
                     w3_ref, b3_ref,
                     w4_ref, b4_ref,
                     o_ref):
    """One (TM,) batch tile -> (TM, OUT_PAD) softmax probabilities (bf16)."""
    labels = labels_ref[...]                          # (TM, 1) int32
    noise = noise_ref[...]                            # (TM, NOISE_PAD) bf16
    tm = noise.shape[0]

    def leaky_relu(h):                                # f32 in, f32 out
        return jnp.where(h > 0, h, 0.2 * h)

    # Layer 1: embedding half via one-hot @ fused table (table = embed@W1a + b1),
    # noise half via a regular matmul.  Both accumulate in f32.
    col = jax.lax.broadcasted_iota(jnp.int32, (tm, CLS_PAD), 1)
    onehot = jnp.where(col == labels, 1.0, 0.0).astype(jnp.bfloat16)
    h = jnp.dot(onehot, t1_ref[...], preferred_element_type=jnp.float32)
    h = h + jnp.dot(noise, w1n_ref[...], preferred_element_type=jnp.float32)
    h = leaky_relu(h).astype(jnp.bfloat16)

    h = jnp.dot(h, w2_ref[...], preferred_element_type=jnp.float32) + b2_ref[...]
    h = leaky_relu(h).astype(jnp.bfloat16)
    h = jnp.dot(h, w3_ref[...], preferred_element_type=jnp.float32) + b3_ref[...]
    h = leaky_relu(h).astype(jnp.bfloat16)
    logits = jnp.dot(h, w4_ref[...], preferred_element_type=jnp.float32) + b4_ref[...]

    # Mask padded class columns so they contribute nothing to the softmax.
    colp = jax.lax.broadcasted_iota(jnp.int32, logits.shape, 1)
    logits = jnp.where(colp < NUM_CLASSES, logits, NEG_BIG)

    # Numerically stable softmax over dim=1 (class axis), f32 throughout.
    m = jnp.max(logits, axis=1, keepdims=True)
    e = jnp.exp(logits - m)
    denom = jnp.sum(e, axis=1, keepdims=True)
    probs = e * pl.reciprocal(denom, approx=False)
    o_ref[...] = probs.astype(o_ref.dtype)            # bf16 store (half writeback)


def init_params(key, latent_dim=LATENT_DIM, num_classes=NUM_CLASSES):
    """Deterministic synthetic parameters matching the module's shapes (f32)."""
    ks = jax.random.split(key, 9)
    dims = [latent_dim * 2, H1, H2, H3, num_classes]

    embed = jax.random.normal(ks[0], (num_classes, latent_dim), jnp.float32) * 0.1

    weights, biases = [], []
    for i in range(4):
        fan_in, fan_out = dims[i], dims[i + 1]
        w = jax.random.normal(ks[1 + 2 * i], (fan_in, fan_out), jnp.float32) * (1.0 / jnp.sqrt(fan_in))
        b = jax.random.normal(ks[2 + 2 * i], (1, fan_out), jnp.float32) * 0.01
        weights.append(w)
        biases.append(b)
    return embed, weights, biases


def prepare_params(embed, weights, biases):
    """Fold embedding + b1 into a per-class table; pad lane-dense; cast bf16."""
    w1 = weights[0]                                   # (200, 128) f32
    # t1[c] = embed[c] @ W1[:100] + b1   (computed in f32, then bf16)
    t1 = embed @ w1[:LATENT_DIM] + biases[0]          # (10, 128)
    t1 = jnp.pad(t1, ((0, CLS_PAD - NUM_CLASSES), (0, 0))).astype(jnp.bfloat16)
    # Noise half of layer 1, rows padded 100 -> 128 (padded noise cols are 0).
    w1n = jnp.pad(w1[LATENT_DIM:], ((0, NOISE_PAD - LATENT_DIM), (0, 0))).astype(jnp.bfloat16)

    w2 = weights[1].astype(jnp.bfloat16)
    w3 = weights[2].astype(jnp.bfloat16)
    w4 = jnp.pad(weights[3], ((0, 0), (0, OUT_PAD - NUM_CLASSES))).astype(jnp.bfloat16)
    b2 = biases[1]
    b3 = biases[2]
    b4 = jnp.pad(biases[3], ((0, 0), (0, OUT_PAD - NUM_CLASSES)))
    return (t1, w1n, w2, b2, w3, b3, w4, b4)


def _round_up(x, m):
    return ((x + m - 1) // m) * m


def generator_forward(labels, noise, packed_params, *, tm=1024):
    """labels: int32 (B,), noise: f32 (B, latent_dim) -> class probs (B, num_classes), bf16."""
    t1, w1n, w2, b2, w3, b3, w4, b4 = packed_params
    B = labels.shape[0]

    # Adaptive batch tile:
    #  - never bigger than the (16-row aligned, bf16 sublane) batch,
    #  - >= 2 grid steps when there's enough work so dimension_semantics
    #    ("parallel",) actually uses both TensorCores on v7x.
    b16 = _round_up(B, 16)
    tm_eff = min(tm, b16)
    if b16 >= 512 and 2 * tm_eff > b16:
        tm_eff = _round_up(pl.cdiv(b16, 2), 16)
    b_pad = _round_up(B, tm_eff)
    n_blocks = b_pad // tm_eff

    # Minimal per-row glue: bf16 noise padded 100->128, int32 labels as (B,1).
    x = noise.astype(jnp.bfloat16)
    x = jnp.pad(x, ((0, b_pad - B), (0, NOISE_PAD - LATENT_DIM)))
    lab = jnp.pad(labels.astype(jnp.int32), (0, b_pad - B)).reshape(b_pad, 1)

    flops = 2 * b_pad * (CLS_PAD * H1 + NOISE_PAD * H1 + H1 * H2 + H2 * H3 + H3 * OUT_PAD)
    bytes_accessed = (
        x.size * 2 + lab.size * 4 + b_pad * OUT_PAD * 2
        + (t1.size + w1n.size + w2.size + w3.size + w4.size) * 2
        + (b2.size + b3.size + b4.size) * 4
    )
    cost = pl.CostEstimate(flops=flops,
                           transcendentals=b_pad * OUT_PAD,
                           bytes_accessed=bytes_accessed)

    full = lambda i: (0, 0)   # weights/biases: same (whole) block every step

    out = pl.pallas_call(
        generator_kernel,
        out_shape=jax.ShapeDtypeStruct((b_pad, OUT_PAD), jnp.bfloat16),
        grid=(n_blocks,),
        in_specs=[
            pl.BlockSpec((tm_eff, 1), lambda i: (i, 0)),          # labels tile
            pl.BlockSpec((tm_eff, NOISE_PAD), lambda i: (i, 0)),  # noise tile
            pl.BlockSpec((CLS_PAD, H1), full),                    # fused embed table
            pl.BlockSpec((NOISE_PAD, H1), full),
            pl.BlockSpec((H1, H2), full),
            pl.BlockSpec((1, H2), full),
            pl.BlockSpec((H2, H3), full),
            pl.BlockSpec((1, H3), full),
            pl.BlockSpec((H3, OUT_PAD), full),
            pl.BlockSpec((1, OUT_PAD), full),
        ],
        out_specs=pl.BlockSpec((tm_eff, OUT_PAD), lambda i: (i, 0)),
        compiler_params=pltpu.CompilerParams(
            dimension_semantics=("parallel",),
            vmem_limit_bytes=48 * 1024 * 1024),
        cost_estimate=cost,
    )(lab, x, t1, w1n, w2, b2, w3, b3, w4, b4)

    # Strip batch and class padding.
    return out[:B, :NUM_CLASSES]


def generator_reference(labels, noise, embed, weights, biases):
    """Plain-JAX f32 reference for correctness checking."""
    x = jnp.concatenate([jnp.take(embed, labels, axis=0), noise], axis=1)
    h = x
    for i in range(3):
        h = jnp.dot(h, weights[i]) + biases[i]
        h = jnp.where(h > 0, h, 0.2 * h)
    logits = jnp.dot(h, weights[3]) + biases[3]
    return jax.nn.softmax(logits, axis=1)


if __name__ == "__main__":
    key = jax.random.PRNGKey(0)
    k_params, k_labels, k_noise = jax.random.split(key, 3)

    batch = 8
    embed, weights, biases = init_params(k_params)
    packed = prepare_params(embed, weights, biases)

    labels = jax.random.randint(k_labels, (batch,), 0, NUM_CLASSES, dtype=jnp.int32)
    noise = jax.random.normal(k_noise, (batch, LATENT_DIM), jnp.float32)

    probs = generator_forward(labels, noise, packed)
    probs = jax.block_until_ready(probs)

    # Sanity: shape, rows of a softmax sum to ~1, and match f32 reference
    # (loose tolerance: bf16 weights/activations/output vs f32 reference).
    assert probs.shape == (batch, NUM_CLASSES)
    probs_f32 = probs.astype(jnp.float32)
    assert jnp.allclose(jnp.sum(probs_f32, axis=1), 1.0, atol=1e-2)
    ref = generator_reference(labels, noise, embed, weights, biases)
    assert jnp.allclose(probs_f32, ref, atol=3e-2), float(jnp.max(jnp.abs(probs_f32 - ref)))

    print("KERNEL_OK")
</pallas_src>

<mosaic_0001>
module attributes {stable_mosaic.version = 11 : i64} {
  func.func @generator_kernel(%arg0: i32, %arg1: memref<16x1xi32, #tpu.memory_space<vmem>>, %arg2: memref<16x128xbf16, #tpu.memory_space<vmem>>, %arg3: memref<128x128xbf16, #tpu.memory_space<vmem>>, %arg4: memref<128x128xbf16, #tpu.memory_space<vmem>>, %arg5: memref<128x256xbf16, #tpu.memory_space<vmem>>, %arg6: memref<1x256xf32, #tpu.memory_space<vmem>>, %arg7: memref<256x512xbf16, #tpu.memory_space<vmem>>, %arg8: memref<1x512xf32, #tpu.memory_space<vmem>>, %arg9: memref<512x128xbf16, #tpu.memory_space<vmem>>, %arg10: memref<1x128xf32, #tpu.memory_space<vmem>>, %arg11: memref<16x128xbf16, #tpu.memory_space<vmem>>) attributes {dimension_semantics = [#tpu.dimension_semantics<parallel>], iteration_bounds = array<i64: 1>, scalar_prefetch = 0 : i64, scratch_operands = 0 : i64, tpu.core_type = #tpu.core_type<tc>, window_params = [{transform_indices = @transform_0, window_bounds = array<i64: 16, 1>}, {transform_indices = @transform_1, window_bounds = array<i64: 16, 128>}, {pipeline_mode = #tpu.pipeline_mode<synchronous>, transform_indices = @transform_2, window_bounds = array<i64: 128, 128>}, {pipeline_mode = #tpu.pipeline_mode<synchronous>, transform_indices = @transform_3, window_bounds = array<i64: 128, 128>}, {pipeline_mode = #tpu.pipeline_mode<synchronous>, transform_indices = @transform_4, window_bounds = array<i64: 128, 256>}, {pipeline_mode = #tpu.pipeline_mode<synchronous>, transform_indices = @transform_5, window_bounds = array<i64: 1, 256>}, {pipeline_mode = #tpu.pipeline_mode<synchronous>, transform_indices = @transform_6, window_bounds = array<i64: 256, 512>}, {pipeline_mode = #tpu.pipeline_mode<synchronous>, transform_indices = @transform_7, window_bounds = array<i64: 1, 512>}, {pipeline_mode = #tpu.pipeline_mode<synchronous>, transform_indices = @transform_8, window_bounds = array<i64: 512, 128>}, {pipeline_mode = #tpu.pipeline_mode<synchronous>, transform_indices = @transform_9, window_bounds = array<i64: 1, 128>}, {transform_indices = @transform_10, window_bounds = array<i64: 16, 128>}]} {
    %c0 = arith.constant 0 : index
    %c0_0 = arith.constant 0 : index
    %0 = vector.load %arg1[%c0, %c0_0] : memref<16x1xi32, #tpu.memory_space<vmem>>, vector<16x1xi32>
    %c0_1 = arith.constant 0 : index
    %c0_2 = arith.constant 0 : index
    %1 = vector.load %arg2[%c0_1, %c0_2] : memref<16x128xbf16, #tpu.memory_space<vmem>>, vector<16x128xbf16>
    %2 = tpu.iota {dimensions = array<i32: 1>} : vector<16x128xi32>
    %3 = vector.broadcast %0 : vector<16x1xi32> to vector<16x128xi32>
    %4 = arith.cmpi eq, %2, %3 : vector<16x128xi32>
    %cst = arith.constant 1.000000e+00 : f32
    %cst_3 = arith.constant 0.000000e+00 : f32
    %5 = vector.broadcast %cst : f32 to vector<16x128xf32>
    %6 = vector.broadcast %cst_3 : f32 to vector<16x128xf32>
    %7 = arith.select %4, %5, %6 : vector<16x128xi1>, vector<16x128xf32>
    %8 = arith.truncf %7 : vector<16x128xf32> to vector<16x128xbf16>
    %c0_4 = arith.constant 0 : index
    %c0_5 = arith.constant 0 : index
    %9 = vector.load %arg3[%c0_4, %c0_5] : memref<128x128xbf16, #tpu.memory_space<vmem>>, vector<128x128xbf16>
    %cst_6 = arith.constant dense<0.000000e+00> : vector<16x128xf32>
    %10 = tpu.matmul %8, %9, %cst_6 {dimension_numbers = #tpu.dot_dimension_numbers<[1], [0], [0], [1], [0, 0, 1, 1], [], []>} : vector<16x128xbf16>, vector<128x128xbf16>, vector<16x128xf32> -> vector<16x128xf32>
    %c0_7 = arith.constant 0 : index
    %c0_8 = arith.constant 0 : index
    %11 = vector.load %arg4[%c0_7, %c0_8] : memref<128x128xbf16, #tpu.memory_space<vmem>>, vector<128x128xbf16>
    %cst_9 = arith.constant dense<0.000000e+00> : vector<16x128xf32>
    %12 = tpu.matmul %1, %11, %cst_9 {dimension_numbers = #tpu.dot_dimension_numbers<[1], [0], [0], [1], [0, 0, 1, 1], [], []>} : vector<16x128xbf16>, vector<128x128xbf16>, vector<16x128xf32> -> vector<16x128xf32>
    %13 = arith.addf %10, %12 : vector<16x128xf32>
    %cst_10 = arith.constant 0.000000e+00 : f32
    %14 = vector.broadcast %cst_10 : f32 to vector<16x128xf32>
    %15 = arith.cmpf ogt, %13, %14 : vector<16x128xf32>
    %cst_11 = arith.constant 2.000000e-01 : f32
    %16 = vector.broadcast %cst_11 : f32 to vector<16x128xf32>
    %17 = arith.mulf %16, %13 : vector<16x128xf32>
    %18 = arith.select %15, %13, %17 : vector<16x128xi1>, vector<16x128xf32>
    %19 = arith.truncf %18 : vector<16x128xf32> to vector<16x128xbf16>
    %c0_12 = arith.constant 0 : index
    %c0_13 = arith.constant 0 : index
    %20 = vector.load %arg5[%c0_12, %c0_13] : memref<128x256xbf16, #tpu.memory_space<vmem>>, vector<128x256xbf16>
    %cst_14 = arith.constant dense<0.000000e+00> : vector<16x256xf32>
    %21 = tpu.matmul %19, %20, %cst_14 {dimension_numbers = #tpu.dot_dimension_numbers<[1], [0], [0], [1], [0, 0, 1, 1], [], []>} : vector<16x128xbf16>, vector<128x256xbf16>, vector<16x256xf32> -> vector<16x256xf32>
    %c0_15 = arith.constant 0 : index
    %c0_16 = arith.constant 0 : index
    %22 = vector.load %arg6[%c0_15, %c0_16] : memref<1x256xf32, #tpu.memory_space<vmem>>, vector<1x256xf32>
    %23 = vector.broadcast %22 : vector<1x256xf32> to vector<16x256xf32>
    %24 = arith.addf %21, %23 : vector<16x256xf32>
    %cst_17 = arith.constant 0.000000e+00 : f32
    %25 = vector.broadcast %cst_17 : f32 to vector<16x256xf32>
    %26 = arith.cmpf ogt, %24, %25 : vector<16x256xf32>
    %cst_18 = arith.constant 2.000000e-01 : f32
    %27 = vector.broadcast %cst_18 : f32 to vector<16x256xf32>
    %28 = arith.mulf %27, %24 : vector<16x256xf32>
    %29 = arith.select %26, %24, %28 : vector<16x256xi1>, vector<16x256xf32>
    %30 = arith.truncf %29 : vector<16x256xf32> to vector<16x256xbf16>
    %c0_19 = arith.constant 0 : index
    %c0_20 = arith.constant 0 : index
    %31 = vector.load %arg7[%c0_19, %c0_20] : memref<256x512xbf16, #tpu.memory_space<vmem>>, vector<256x512xbf16>
    %cst_21 = arith.constant dense<0.000000e+00> : vector<16x512xf32>
    %32 = tpu.matmul %30, %31, %cst_21 {dimension_numbers = #tpu.dot_dimension_numbers<[1], [0], [0], [1], [0, 0, 1, 1], [], []>} : vector<16x256xbf16>, vector<256x512xbf16>, vector<16x512xf32> -> vector<16x512xf32>
    %c0_22 = arith.constant 0 : index
    %c0_23 = arith.constant 0 : index
    %33 = vector.load %arg8[%c0_22, %c0_23] : memref<1x512xf32, #tpu.memory_space<vmem>>, vector<1x512xf32>
    %34 = vector.broadcast %33 : vector<1x512xf32> to vector<16x512xf32>
    %35 = arith.addf %32, %34 : vector<16x512xf32>
    %cst_24 = arith.constant 0.000000e+00 : f32
    %36 = vector.broadcast %cst_24 : f32 to vector<16x512xf32>
    %37 = arith.cmpf ogt, %35, %36 : vector<16x512xf32>
    %cst_25 = arith.constant 2.000000e-01 : f32
    %38 = vector.broadcast %cst_25 : f32 to vector<16x512xf32>
    %39 = arith.mulf %38, %35 : vector<16x512xf32>
    %40 = arith.select %37, %35, %39 : vector<16x512xi1>, vector<16x512xf32>
    %41 = arith.truncf %40 : vector<16x512xf32> to vector<16x512xbf16>
    %c0_26 = arith.constant 0 : index
    %c0_27 = arith.constant 0 : index
    %42 = vector.load %arg9[%c0_26, %c0_27] : memref<512x128xbf16, #tpu.memory_space<vmem>>, vector<512x128xbf16>
    %cst_28 = arith.constant dense<0.000000e+00> : vector<16x128xf32>
    %43 = tpu.matmul %41, %42, %cst_28 {dimension_numbers = #tpu.dot_dimension_numbers<[1], [0], [0], [1], [0, 0, 1, 1], [], []>} : vector<16x512xbf16>, vector<512x128xbf16>, vector<16x128xf32> -> vector<16x128xf32>
    %c0_29 = arith.constant 0 : index
    %c0_30 = arith.constant 0 : index
    %44 = vector.load %arg10[%c0_29, %c0_30] : memref<1x128xf32, #tpu.memory_space<vmem>>, vector<1x128xf32>
    %45 = vector.broadcast %44 : vector<1x128xf32> to vector<16x128xf32>
    %46 = arith.addf %43, %45 : vector<16x128xf32>
    %47 = tpu.iota {dimensions = array<i32: 1>} : vector<16x128xi32>
    %c10_i32 = arith.constant 10 : i32
    %48 = vector.broadcast %c10_i32 : i32 to vector<16x128xi32>
    %49 = arith.cmpi slt, %47, %48 : vector<16x128xi32>
    %cst_31 = arith.constant -1.000000e+30 : f32
    %50 = vector.broadcast %cst_31 : f32 to vector<16x128xf32>
    %51 = arith.select %49, %46, %50 : vector<16x128xi1>, vector<16x128xf32>
    %cst_32 = arith.constant dense<0xFF800000> : vector<16xf32>
    %52 = vector.multi_reduction <maximumf>, %51, %cst_32 [1] : vector<16x128xf32> to vector<16xf32>
    %53 = vector.shape_cast %52 : vector<16xf32> to vector<16x1xf32>
    %54 = vector.broadcast %53 : vector<16x1xf32> to vector<16x128xf32>
    %55 = arith.subf %51, %54 : vector<16x128xf32>
    %56 = math.exp %55 : vector<16x128xf32>
    %cst_33 = arith.constant dense<0.000000e+00> : vector<16xf32>
    %57 = vector.multi_reduction <add>, %56, %cst_33 [1] : vector<16x128xf32> to vector<16xf32>
    %58 = vector.shape_cast %57 : vector<16xf32> to vector<16x1xf32>
    %59 = tpu.reciprocal %58 : vector<16x1xf32> -> vector<16x1xf32>
    %60 = vector.broadcast %59 : vector<16x1xf32> to vector<16x128xf32>
    %61 = arith.mulf %56, %60 : vector<16x128xf32>
    %62 = arith.truncf %61 : vector<16x128xf32> to vector<16x128xbf16>
    %c0_34 = arith.constant 0 : index
    %c0_35 = arith.constant 0 : index
    %63 = vector.load %arg11[%c0_34, %c0_35] : memref<16x128xbf16, #tpu.memory_space<vmem>>, vector<16x128xbf16>
    tpu.vector_store %arg11[%c0_34, %c0_35], %62 {strides = array<i32>} : memref<16x128xbf16, #tpu.memory_space<vmem>>, vector<16x128xbf16>,
    return
  }
  func.func @transform_0(%arg0: i32) -> (i32, i32) {
    %c0_i32 = arith.constant 0 : i32
    %c0_i32_0 = arith.constant 0 : i32
    return %arg0, %c0_i32 : i32, i32
  }
  func.func @transform_1(%arg0: i32) -> (i32, i32) {
    %c0_i32 = arith.constant 0 : i32
    %c0_i32_0 = arith.constant 0 : i32
    return %arg0, %c0_i32 : i32, i32
  }
  func.func @transform_2(%arg0: i32) -> (i32, i32) {
    %c0_i32 = arith.constant 0 : i32
    %c0_i32_0 = arith.constant 0 : i32
    %c0_i32_1 = arith.constant 0 : i32
    return %c0_i32, %c0_i32_0 : i32, i32
  }
  func.func @transform_3(%arg0: i32) -> (i32, i32) {
    %c0_i32 = arith.constant 0 : i32
    %c0_i32_0 = arith.constant 0 : i32
    %c0_i32_1 = arith.constant 0 : i32
    return %c0_i32, %c0_i32_0 : i32, i32
  }
  func.func @transform_4(%arg0: i32) -> (i32, i32) {
    %c0_i32 = arith.constant 0 : i32
    %c0_i32_0 = arith.constant 0 : i32
    %c0_i32_1 = arith.constant 0 : i32
    return %c0_i32, %c0_i32_0 : i32, i32
  }
  func.func @transform_5(%arg0: i32) -> (i32, i32) {
    %c0_i32 = arith.constant 0 : i32
    %c0_i32_0 = arith.constant 0 : i32
    %c0_i32_1 = arith.constant 0 : i32
    return %c0_i32, %c0_i32_0 : i32, i32
  }
  func.func @transform_6(%arg0: i32) -> (i32, i32) {
    %c0_i32 = arith.constant 0 : i32
    %c0_i32_0 = arith.constant 0 : i32
    %c0_i32_1 = arith.constant 0 : i32
    return %c0_i32, %c0_i32_0 : i32, i32
  }
  func.func @transform_7(%arg0: i32) -> (i32, i32) {
    %c0_i32 = arith.constant 0 : i32
    %c0_i32_0 = arith.constant 0 : i32
    %c0_i32_1 = arith.constant 0 : i32
    return %c0_i32, %c0_i32_0 : i32, i32
  }
  func.func @transform_8(%arg0: i32) -> (i32, i32) {
    %c0_i32 = arith.constant 0 : i32
    %c0_i32_0 = arith.constant 0 : i32
    %c0_i32_1 = arith.constant 0 : i32
    return %c0_i32, %c0_i32_0 : i32, i32
  }
  func.func @transform_9(%arg0: i32) -> (i32, i32) {
    %c0_i32 = arith.constant 0 : i32
    %c0_i32_0 = arith.constant 0 : i32
    %c0_i32_1 = arith.constant 0 : i32
    return %c0_i32, %c0_i32_0 : i32, i32
  }
  func.func @transform_10(%arg0: i32) -> (i32, i32) {
    %c0_i32 = arith.constant 0 : i32
    %c0_i32_0 = arith.constant 0 : i32
    return %arg0, %c0_i32 : i32, i32
  }
}

</mosaic_0001>

<bundles_post_ra>
// kernel: tpu_custom_call.1
= control target key start
LH: loop header
LB: loop body
LE: loop exit
PB: predicated region body
PF: predicated region fallthrough
CT: control target
= control target key end

     0   :  { %15 = vsyncpa [#allocation3], 0  ;;  %s2322_s0 = inlined_call_operand.vmem [shape: s32[16,1], index: 0, kind: input, shape index: {}]   ;;  %s2323_s1 = inlined_call_operand.vmem [shape: bf16[16,128], index: 1, kind: input, shape index: {}]   ;;  %s2324_s2 = inlined_call_operand.hbm [shape: bf16[128,128], index: 2, kind: input, shape index: {}]   ;;  %s2325_s3 = inlined_call_operand.hbm [shape: bf16[128,128], index: 3, kind: input, shape index: {}]   ;;  %s2326_s4 = inlined_call_operand.hbm [shape: bf16[128,256], index: 4, kind: input, shape index: {}]   ;;  %s2327_s5 = inlined_call_operand.vmem [shape: f32[1,256], index: 5, kind: input, shape index: {}]   ;;  %s2328_s6 = inlined_call_operand.hbm [shape: bf16[256,512], index: 6, kind: input, shape index: {}]   ;;  %s2329_s7 = inlined_call_operand.vmem [shape: f32[1,512], index: 7, kind: input, shape index: {}]   ;;  %s2330_s8 = inlined_call_operand.hbm [shape: bf16[512,128], index: 8, kind: input, shape index: {}]   ;;  %s2331_s9 = inlined_call_operand.vmem [shape: f32[1,128], index: 9, kind: input, shape index: {}]   ;;  %s2332_s10 = inlined_call_operand.hbm [shape: bf16[16,128], index: 10, kind: output, shape index: {}]  }
   0x1   :  { %16 = vsyncpa [#allocation6], 0 }
   0x2   :  { %17 = vsyncpa [#allocation9], 0 }
   0x3   :  { %18 = vsyncpa [#allocation4], 0  ;;  %s40_s15 = sshll.u32 %s2325_s3, 4  ;;  %s2194_s16 = smov [#allocation5]   ;;  %s41_s15 = int_to_ptr.hbm [resolvable:$true] %s40_s15 }
   0x4   :  { %s42_s17 = sshll.u32 %s2194_s16, 4  ;;  %s68_s20 = sshll.u32 %s2328_s6, 4  ;;  %s43_s17 = int_to_ptr.vmem [resolvable:$true] %s42_s17  ;;  %s69_s20 = int_to_ptr.hbm [resolvable:$true] %s68_s20 }
   0x5   :  { %s2195_s21 = smov 64   ;;  %s2196_s22 = smov 4  }
   0x6   :  { %48 = dma.hbm_to_vmem [thread:$0]  %s41_s15, 1024, %s43_s17, [#allocation6], %s2195_s21, %s2195_s21, %s2196_s22  }
   0x7   :  { %s2197_s23 = smov [#allocation8]   ;;  %s2198_s25 = smov 256  }
   0x8   :  { %s70_s24 = sshll.u32 %s2197_s23, 4  ;;  %s2199_s3 = smov 16   ;;  %s71_s24 = int_to_ptr.vmem [resolvable:$true] %s70_s24 }
   0x9   :  { %76 = dma.hbm_to_vmem [thread:$0]  %s69_s20, 8192, %s71_s24, [#allocation9], %s2198_s25, %s2198_s25, %s2199_s3  }
   0xa   :  { %s27_s28 = sshll.u32 %s2324_s2, 4  ;;  %s2200_s29 = smov [#allocation2]   ;;  %s28_s28 = int_to_ptr.hbm [resolvable:$true] %s27_s28 }
   0xb   :  { %s29_s6 = sshll.u32 %s2200_s29, 4  ;;  %s53_s12 = sshll.u32 %s2326_s4, 4  ;;  %s30_s6 = int_to_ptr.vmem [resolvable:$true] %s29_s6  ;;  %s54_s12 = int_to_ptr.hbm [resolvable:$true] %s53_s12 }
   0xc   :  { %35 = dma.hbm_to_vmem [thread:$0]  %s28_s28, 1024, %s30_s6, [#allocation3], %s2195_s21, %s2195_s21, %s2196_s22  }
   0xd   :  { %s2201_s13 = smov [#allocation7]   ;;  %s2202_s15 = smov 128  }
   0xe   :  { %s55_s14 = sshll.u32 %s2201_s13, 4  ;;  %s2203_s16 = smov 8   ;;  %s56_s14 = int_to_ptr.vmem [resolvable:$true] %s55_s14 }
   0xf   :  { %61 = dma.hbm_to_vmem [thread:$0]  %s54_s12, 2048, %s56_s14, [#allocation6], %s2202_s15, %s2202_s15, %s2203_s16  }
  0x10   :  { %s83_s18 = sshll.u32 %s2330_s8, 4  ;;  %s2204_s19 = smov [#allocation10]   ;;  %s84_s18 = int_to_ptr.hbm [resolvable:$true] %s83_s18 }
  0x11   :  { %s85_s20 = sshll.u32 %s2204_s19, 4  ;;  %s86_s20 = int_to_ptr.vmem [resolvable:$true] %s85_s20 }
  0x12   :  { %91 = dma.hbm_to_vmem [thread:$0]  %s84_s18, 4096, %s86_s20, [#allocation9], %s2195_s21, %s2195_s21, %s2196_s22  }
  0x13   :  { %2186 = dma.done.wait [#allocation3], 1024  }
  0x14   :  { %2187 = vsyncadd [#allocation3], 4294966272 }
  0x15   :  { %2188 = dma.done.wait [#allocation6], 3072  }
  0x16   :  { %2189 = vsyncadd [#allocation6], 4294964224 }
  0x17   :  { %2190 = dma.done.wait [#allocation9], 12288  }
  0x18   :  { %2191 = vsyncadd [#allocation9], 4294955008  ;;  %v2205_v0 = vmov 0   ;;  %v114_v1 = vld [vmem:[%s2322_s0] sm:$0xff]  ;;  %v1900_v2 = vld [vmem:[#allocation5 + $0x38] sm:$0xff]  ;;  %v118_v33 = vlaneseq  ;;  %s1351_s30 = sshll.u32 %s2332_s10, 4  ;;  %s1352_s30 = int_to_ptr.hbm [resolvable:$true] %s1351_s30 }
  0x19   :  { %2032 = vset.pattern.permute.xlu0 %v2205_v0  ;;  %v1892_v3 = vld [vmem:[#allocation2 + $0x38] sm:$0xff]  ;;  %217 = vmatpush.bf16.msra.mxu0 %v1900_v2  ;;  %v1899_v4 = vld [vmem:[#allocation5 + $0x30] sm:$0xff]  ;;  %v115_v6 = vld [vmem:[%s2322_s0 + $0x8] sm:$0xff]  ;;  %v2206_v36 = vmov 1.0|1.0  }
  0x1a   :  { %121 = vperm.xlu0 %2032, %v114_v1   ;;  %279 = vmatpush.bf16.msra.mxu1 %v1892_v3  ;;  %v1891_v5 = vld [vmem:[#allocation2 + $0x30] sm:$0xff]  ;;  %v1898_v7 = vld [vmem:[#allocation5 + $0x28] sm:$0xff]  ;;  %v1897_v9 = vld [vmem:[#allocation5 + $0x20] sm:$0xff]  ;;  %v2296_v34 = vand.u32 127, %v118_v33 }
  0x1b   :  { %v1890_v8 = vld [vmem:[#allocation2 + $0x28] sm:$0xff]  ;;  %v1889_v10 = vld [vmem:[#allocation2 + $0x20] sm:$0xff]  ;;  %v1896_v11 = vld [vmem:[#allocation5 + $0x18] sm:$0xff] }
  0x1c   :  { %v1888_v12 = vld [vmem:[#allocation2 + $0x18] sm:$0xff]  ;;  %v1895_v13 = vld [vmem:[#allocation5 + $0x10] sm:$0xff]  ;;  %v1894_v15 = vld [vmem:[#allocation5 + $0x8] sm:$0xff] }
  0x1d   :  { %218 = vmatpush.bf16.msra.mxu0 %v1899_v4  ;;  %v1887_v14 = vld [vmem:[#allocation2 + $0x10] sm:$0xff]  ;;  %v1893_v16 = vld [vmem:[#allocation5] sm:$0xff]  ;;  %v1886_v18 = vld [vmem:[#allocation2 + $0x8] sm:$0xff] }
  0x1e   :  { %280 = vmatpush.bf16.msra.mxu1 %v1891_v5  ;;  %v1884_v17 = vld [vmem:[%s2323_s1] sm:$0xff]  ;;  %v1494_v20 = vld [vmem:[#allocation7 + $0x70] sm:$0xf]  ;;  %v1916_v21 = vld [vmem:[#allocation7 + $0x74] sm:$0xf0] }
  0x1f   :  { %v1885_v19 = vld [vmem:[#allocation2] sm:$0xff]  ;;  %v1915_v22 = vld [vmem:[#allocation7 + $0x74] sm:$0xf]  ;;  %v1495_v23 = vor.u32 %v1916_v21, %v1494_v20  ;;  %v1496_v24 = vld [vmem:[#allocation7 + $0x78] sm:$0xf0] }
  0x20   :  { %v1486_v25 = vld [vmem:[#allocation7 + $0x60] sm:$0xf]  ;;  %v1914_v26 = vld [vmem:[#allocation7 + $0x64] sm:$0xf0]  ;;  %v1499_v27 = vor.u32 %v1915_v22, %v1496_v24  ;;  %v1913_v28 = vld [vmem:[#allocation7 + $0x64] sm:$0xf] }
  0x21   :  { %219 = vmatpush.bf16.msra.mxu0 %v1898_v7  ;;  %v1488_v29 = vld [vmem:[#allocation7 + $0x68] sm:$0xf0]  ;;  %402 = vmatpush.bf16.msra.mxu2 %v1495_v23  ;;  %v1487_v30 = vor.u32 %v1914_v26, %v1486_v25  ;;  %v1478_v37 = vld [vmem:[#allocation7 + $0x50] sm:$0xf]  ;;  %v1912_v38 = vld [vmem:[#allocation7 + $0x54] sm:$0xf0] }
  0x22   :  { %124 = vperm.xlu0 %2032, %v115_v6   ;;  %281 = vmatpush.bf16.msra.mxu1 %v1890_v8  ;;  %v1491_v31 = vor.u32 %v1913_v28, %v1488_v29  ;;  %v1911_v39 = vld [vmem:[#allocation7 + $0x54] sm:$0xf]  ;;  %v1479_v40 = vor.u32 %v1912_v38, %v1478_v37  ;;  %v1480_v41 = vld [vmem:[#allocation7 + $0x58] sm:$0xf0]  ;;  %v1470_v42 = vld [vmem:[#allocation7 + $0x40] sm:$0xf] }
  0x23   :  { %416 = vmatpush.bf16.msra.mxu3 %v1499_v27  ;;  %v1910_v43 = vld [vmem:[#allocation7 + $0x44] sm:$0xf0]  ;;  %v1483_v44 = vor.u32 %v1911_v39, %v1480_v41  ;;  %v1909_v45 = vld [vmem:[#allocation7 + $0x44] sm:$0xf]  ;;  %v1472_v46 = vld [vmem:[#allocation7 + $0x48] sm:$0xf0] }
  0x24   :  { %v1471_v47 = vor.u32 %v1910_v43, %v1470_v42  ;;  %v1475_v48 = vor.u32 %v1909_v45, %v1472_v46  ;;  %v1462_v49 = vld [vmem:[#allocation7 + $0x30] sm:$0xf]  ;;  %v1908_v50 = vld [vmem:[#allocation7 + $0x34] sm:$0xf0]  ;;  %v1907_v51 = vld [vmem:[#allocation7 + $0x34] sm:$0xf] }
  0x25   :  { %220 = vmatpush.bf16.msra.mxu0 %v1897_v9  ;;  %403 = vmatpush.bf16.msra.mxu2 %v1487_v30  ;;  %v1463_v52 = vor.u32 %v1908_v50, %v1462_v49  ;;  %v1464_v53 = vld [vmem:[#allocation7 + $0x38] sm:$0xf0]  ;;  %v1454_v55 = vld [vmem:[#allocation7 + $0x20] sm:$0xf]  ;;  %v1906_v56 = vld [vmem:[#allocation7 + $0x24] sm:$0xf0] }
  0x26   :  { %282 = vmatpush.bf16.msra.mxu1 %v1889_v10  ;;  %v1467_v54 = vor.u32 %v1907_v51, %v1464_v53  ;;  %v1905_v57 = vld [vmem:[#allocation7 + $0x24] sm:$0xf]  ;;  %v1455_v58 = vor.u32 %v1906_v56, %v1454_v55  ;;  %v1456_v59 = vld [vmem:[#allocation7 + $0x28] sm:$0xf0]  ;;  %v1446_v61 = vld [vmem:[#allocation7 + $0x10] sm:$0xf] }
  0x27   :  { %417 = vmatpush.bf16.msra.mxu3 %v1491_v31  ;;  %v1459_v60 = vor.u32 %v1905_v57, %v1456_v59  ;;  %v1904_v62 = vld [vmem:[#allocation7 + $0x14] sm:$0xf0]  ;;  %v1903_v63 = vld [vmem:[#allocation7 + $0x14] sm:$0xf]  ;;  %v1448_v1 = vld [vmem:[#allocation7 + $0x18] sm:$0xf0] }
  0x28   :  { %v1447_v0 = vor.u32 %v1904_v62, %v1446_v61  ;;  %v1451_v2 = vor.u32 %v1903_v63, %v1448_v1  ;;  %v1438_v3 = vld [vmem:[#allocation7] sm:$0xf]  ;;  %v1902_v4 = vld [vmem:[#allocation7 + $0x4] sm:$0xf0]  ;;  %v1901_v5 = vld [vmem:[#allocation7 + $0x4] sm:$0xf] }
  0x29   :  { %221 = vmatpush.bf16.msra.mxu0 %v1896_v11  ;;  %404 = vmatpush.bf16.msra.mxu2 %v1479_v40  ;;  %v1439_v6 = vor.u32 %v1902_v4, %v1438_v3  ;;  %v1440_v7 = vld [vmem:[#allocation7 + $0x8] sm:$0xf0]  ;;  %v1614_v9 = vld [vmem:[#allocation8 + $0xe0] sm:$0xf]  ;;  %v1947_v10 = vld [vmem:[#allocation8 + $0xec] sm:$0xf0] }
  0x2a   :  { %283 = vmatpush.bf16.msra.mxu1 %v1888_v12  ;;  %v1443_v8 = vor.u32 %v1901_v5, %v1440_v7  ;;  %v1742_v11 = vld [vmem:[#allocation8 + $0x1e0] sm:$0xf]  ;;  %v1615_v12 = vor.u32 %v1947_v10, %v1614_v9  ;;  %v1943_v22 = vld [vmem:[#allocation8 + $0xcc] sm:$0xf0]  ;;  %v1941_v27 = vld [vmem:[#allocation8 + $0xc4] sm:$0xf] }
  0x2b   :  { %418 = vmatpush.bf16.msra.mxu3 %v1483_v44  ;;  %v1598_v20 = vld [vmem:[#allocation8 + $0xc0] sm:$0xf]  ;;  %v1975_v24 = vld [vmem:[#allocation8 + $0x1cc] sm:$0xf0]  ;;  %v1600_v28 = vld [vmem:[#allocation8 + $0xd0] sm:$0xf0] }
  0x2c   :  { %v1726_v23 = vld [vmem:[#allocation8 + $0x1c0] sm:$0xf]  ;;  %v1599_v25 = vor.u32 %v1943_v22, %v1598_v20  ;;  %v1973_v29 = vld [vmem:[#allocation8 + $0x1c4] sm:$0xf]  ;;  %v1603_v30 = vor.u32 %v1941_v27, %v1600_v28  ;;  %v1728_v31 = vld [vmem:[#allocation8 + $0x1d0] sm:$0xf0] }
  0x2d   :  { %222 = vmatpush.bf16.msra.mxu0 %v1895_v13  ;;  %405 = vmatpush.bf16.msra.mxu2 %v1471_v47  ;;  %v1979_v13 = vld [vmem:[#allocation8 + $0x1ec] sm:$0xf0]  ;;  %v1727_v26 = vor.u32 %v1975_v24, %v1726_v23  ;;  %v1937_v38 = vld [vmem:[#allocation8 + $0xa4] sm:$0xf]  ;;  %v1584_v40 = vld [vmem:[#allocation8 + $0xb0] sm:$0xf0] }
  0x2e   :  { %284 = vmatpush.bf16.msra.mxu1 %v1887_v14  ;;  %v1945_v14 = vld [vmem:[#allocation8 + $0xe4] sm:$0xf]  ;;  %v1939_v33 = vld [vmem:[#allocation8 + $0xac] sm:$0xf0]  ;;  %v1712_v42 = vld [vmem:[#allocation8 + $0x1b0] sm:$0xf0]  ;;  %v1587_v44 = vor.u32 %v1937_v38, %v1584_v40 }
  0x2f   :  { %419 = vmatpush.bf16.msra.mxu3 %v1475_v48  ;;  %v1971_v37 = vld [vmem:[#allocation8 + $0x1ac] sm:$0xf0]  ;;  %v1969_v41 = vld [vmem:[#allocation8 + $0x1a4] sm:$0xf]  ;;  %v1566_v45 = vld [vmem:[#allocation8 + $0x80] sm:$0xf] }
  0x30   :  { %v1935_v46 = vld [vmem:[#allocation8 + $0x8c] sm:$0xf0]  ;;  %v1694_v47 = vld [vmem:[#allocation8 + $0x180] sm:$0xf]  ;;  %v1715_v48 = vor.u32 %v1969_v41, %v1712_v42  ;;  %v1933_v50 = vld [vmem:[#allocation8 + $0x84] sm:$0xf] }
  0x31   :  { %223 = vmatpush.bf16.msra.mxu0 %v1894_v15  ;;  %406 = vmatpush.bf16.msra.mxu2 %v1463_v52  ;;  %v1616_v15 = vld [vmem:[#allocation8 + $0xf0] sm:$0xf0]  ;;  %v1967_v49 = vld [vmem:[#allocation8 + $0x18c] sm:$0xf0]  ;;  %v1965_v52 = vld [vmem:[#allocation8 + $0x184] sm:$0xf] }
  0x32   :  { %285 = vmatpush.bf16.msra.mxu1 %v1886_v18  ;;  %v1977_v18 = vld [vmem:[#allocation8 + $0x1e4] sm:$0xf]  ;;  %v1568_v51 = vld [vmem:[#allocation8 + $0x90] sm:$0xf0]  ;;  %v1695_v55 = vor.u32 %v1967_v49, %v1694_v47  ;;  %v1550_v57 = vld [vmem:[#allocation8 + $0x60] sm:$0xf] }
  0x33   :  { %420 = vmatpush.bf16.msra.mxu3 %v1467_v54  ;;  %v1696_v53 = vld [vmem:[#allocation8 + $0x190] sm:$0xf0]  ;;  %v1567_v54 = vor.u32 %v1935_v46, %v1566_v45  ;;  %v1571_v56 = vor.u32 %v1933_v50, %v1568_v51  ;;  %v1678_v59 = vld [vmem:[#allocation8 + $0x160] sm:$0xf]  ;;  %v1963_v61 = vld [vmem:[#allocation8 + $0x16c] sm:$0xf0] }
  0x34   :  { %v1929_v62 = vld [vmem:[#allocation8 + $0x64] sm:$0xf]  ;;  %v1552_v63 = vld [vmem:[#allocation8 + $0x70] sm:$0xf0]  ;;  %v1679_v5 = vor.u32 %v1963_v61, %v1678_v59  ;;  %v1534_v7 = vld [vmem:[#allocation8 + $0x40] sm:$0xf] }
  0x35   :  { %224 = vmatpush.bf16.msra.mxu0 %v1893_v16  ;;  %407 = vmatpush.bf16.msra.mxu2 %v1455_v58  ;;  %v1743_v16 = vor.u32 %v1979_v13, %v1742_v11  ;;  %v1931_v58 = vld [vmem:[#allocation8 + $0x6c] sm:$0xf0]  ;;  %v1961_v1 = vld [vmem:[#allocation8 + $0x164] sm:$0xf]  ;;  %v1662_v9 = vld [vmem:[#allocation8 + $0x140] sm:$0xf] }
  0x36   :  { %286 = vmatpush.bf16.msra.mxu1 %v1885_v19  ;;  %v1744_v19 = vld [vmem:[#allocation8 + $0x1f0] sm:$0xf0]  ;;  %v1551_v3 = vor.u32 %v1931_v58, %v1550_v57  ;;  %v1959_v11 = vld [vmem:[#allocation8 + $0x14c] sm:$0xf0]  ;;  %v1953_v27 = vld [vmem:[#allocation8 + $0x124] sm:$0xf] }
  0x37   :  { %421 = vmatpush.bf16.msra.mxu3 %v1459_v60  ;;  %v1747_v21 = vor.u32 %v1977_v18, %v1744_v19  ;;  %v1699_v60 = vor.u32 %v1965_v52, %v1696_v53  ;;  %v1536_v13 = vld [vmem:[#allocation8 + $0x50] sm:$0xf0]  ;;  %v1518_v19 = vld [vmem:[#allocation8 + $0x20] sm:$0xf]  ;;  %v1923_v20 = vld [vmem:[#allocation8 + $0x2c] sm:$0xf0] }
  0x38   :  { %225 = vmatmul.bf16.vlgmr.msra.gmra.mxu0 %v1884_v17  ;;  %v1619_v17 = vor.u32 %v1945_v14, %v1616_v15  ;;  %v1957_v14 = vld [vmem:[#allocation8 + $0x144] sm:$0xf]  ;;  %v1664_v15 = vld [vmem:[#allocation8 + $0x150] sm:$0xf0]  ;;  %v1955_v24 = vld [vmem:[#allocation8 + $0x12c] sm:$0xf0] }
  0x39   :  { %408 = vmatpush.bf16.msra.mxu2 %v1447_v0  ;;  %838 = vmatpush.bf16.msrb.mxu0 %v1615_v12  ;;  %v1925_v12 = vld [vmem:[#allocation8 + $0x44] sm:$0xf]  ;;  %v1667_v23 = vor.u32 %v1957_v14, %v1664_v15  ;;  %v1648_v28 = vld [vmem:[#allocation8 + $0x130] sm:$0xf0]  ;;  %v1502_v42 = vld [vmem:[#allocation8] sm:$0xf] }
  0x3a   :  { %852 = vmatpush.bf16.msrb.mxu1 %v1743_v16  ;;  %v1539_v18 = vor.u32 %v1925_v12, %v1536_v13  ;;  %v1951_v46 = vld [vmem:[#allocation8 + $0x10c] sm:$0xf0]  ;;  %v1917_v47 = vld [vmem:[#allocation8 + $0x4] sm:$0xf]  ;;  %v1632_v52 = vld [vmem:[#allocation8 + $0x110] sm:$0xf0] }
  0x3b   :  { %422 = vmatpush.bf16.msra.mxu3 %v1451_v2  ;;  %v1680_v2 = vld [vmem:[#allocation8 + $0x170] sm:$0xf0]  ;;  %v1949_v51 = vld [vmem:[#allocation8 + $0x104] sm:$0xf]  ;;  %v1980_v58 = vld [vmem:[#allocation8 + $0x1f4] sm:$0xf0] }
  0x3c   :  { %v1683_v10 = vor.u32 %v1961_v1, %v1680_v2  ;;  %v1635_v53 = vor.u32 %v1949_v51, %v1632_v52  ;;  %v1946_v59 = vld [vmem:[#allocation8 + $0xec] sm:$0xf]  ;;  %v1606_v1 = vld [vmem:[#allocation8 + $0xc8] sm:$0xf]  ;;  %v1736_v12 = vld [vmem:[#allocation8 + $0x1d8] sm:$0xf0] }
  0x3d   :  { %409 = vmatpush.bf16.msra.mxu2 %v1439_v6  ;;  %839 = vmatpush.bf16.msrb.mxu0 %v1599_v25  ;;  %v1555_v6 = vor.u32 %v1929_v62, %v1552_v63  ;;  %v1921_v25 = vld [vmem:[#allocation8 + $0x24] sm:$0xf]  ;;  %v1978_v63 = vld [vmem:[#allocation8 + $0x1ec] sm:$0xf]  ;;  %v1590_v14 = vld [vmem:[#allocation8 + $0xa8] sm:$0xf] }
  0x3e   :  { %853 = vmatpush.bf16.msrb.mxu1 %v1727_v26  ;;  %v1520_v26 = vld [vmem:[#allocation8 + $0x30] sm:$0xf0]  ;;  %v1940_v15 = vld [vmem:[#allocation8 + $0xb4] sm:$0xf0] }
  0x3f   :  { %423 = vmatpush.bf16.msra.mxu3 %v1443_v8  ;;  %v1927_v8 = vld [vmem:[#allocation8 + $0x4c] sm:$0xf0]  ;;  %v1928_v52 = vld [vmem:[#allocation8 + $0x54] sm:$0xf0] }
  0x40   :  { %v1535_v16 = vor.u32 %v1927_v8, %v1534_v7  ;;  %v1942_v8 = vld [vmem:[#allocation8 + $0xcc] sm:$0xf] }
  0x41   :  { %866 = vmatpush.bf16.msrb.mxu2 %v1619_v17  ;;  %v1663_v17 = vor.u32 %v1959_v11, %v1662_v9  ;;  %v1608_v9 = vld [vmem:[#allocation8 + $0xd8] sm:$0xf0] }
  0x42   :  { %v1611_v11 = vor.u32 %v1942_v8, %v1608_v9 }
  0x43   :  { %880 = vmatpush.bf16.msrb.mxu3 %v1747_v21  ;;  %v1646_v21 = vld [vmem:[#allocation8 + $0x120] sm:$0xf] }
  0x45   :  { %867 = vmatpush.bf16.msrb.mxu2 %v1603_v30 }
  0x49   :  { %868 = vmatpush.bf16.msrb.mxu2 %v1587_v44  ;;  %v1630_v44 = vld [vmem:[#allocation8 + $0x100] sm:$0xf] }
  0x4a   :  { %v1631_v49 = vor.u32 %v1951_v46, %v1630_v44  ;;  %v1930_v44 = vld [vmem:[#allocation8 + $0x6c] sm:$0xf] }
  0x4d   :  { %869 = vmatpush.bf16.msrb.mxu2 %v1571_v56  ;;  %v1750_v56 = vld [vmem:[#allocation8 + $0x1e8] sm:$0xf] }
  0x4e   :  { %v1751_v61 = vor.u32 %v1980_v58, %v1750_v56  ;;  %v1926_v56 = vld [vmem:[#allocation8 + $0x4c] sm:$0xf] }
  0x4f   :  { %v1958_v58 = vld [vmem:[#allocation8 + $0x14c] sm:$0xf] }
  0x51   :  { %870 = vmatpush.bf16.msrb.mxu2 %v1555_v6 }
  0x55   :  { %871 = vmatpush.bf16.msrb.mxu2 %v1539_v18  ;;  %v1972_v18 = vld [vmem:[#allocation8 + $0x1b4] sm:$0xf0] }
  0x8c   :  { %v122_v32 = vpop.permute.xlu0 %121 }
  0x8d   :  { %vm126_vm0 = vcmp.eq.s32.totalorder %v2296_v34, %v122_v32  ;;  %v1582_v32 = vld [vmem:[#allocation8 + $0xa0] sm:$0xf] }
  0x8e   :  { %v1583_v39 = vor.u32 %v1939_v33, %v1582_v32  ;;  %v1647_v32 = vor.u32 %v1955_v24, %v1646_v21  ;;  %v1523_v33 = vor.u32 %v1921_v25, %v1520_v26  ;;  %v1720_v24 = vld [vmem:[#allocation8 + $0x1b8] sm:$0xf0]  ;;  %v1574_v26 = vld [vmem:[#allocation8 + $0x88] sm:$0xf] }
  0x90   :  { %840 = vmatpush.bf16.msrb.mxu0 %v1583_v39  ;;  %872 = vmatpush.bf16.msrb.mxu2 %v1523_v33 }
  0x94   :  { %v125_v35 = vpop.permute.xlu0 %124  ;;  %841 = vmatpush.bf16.msrb.mxu0 %v1567_v54  ;;  %v1622_v54 = vld [vmem:[#allocation8 + $0xe8] sm:$0xf] }
  0x95   :  { %vm127_vm1 = vcmp.eq.s32.totalorder %v2296_v34, %v125_v35  ;;  %v1731_v35 = vor.u32 %v1973_v29, %v1728_v31  ;;  %v1519_v29 = vor.u32 %v1923_v20, %v1518_v19  ;;  %v1938_v19 = vld [vmem:[#allocation8 + $0xac] sm:$0xf]  ;;  %v1592_v20 = vld [vmem:[#allocation8 + $0xb8] sm:$0xf0] }
  0x96   :  { %vm1434_vm2 = vmpackc.low %vm127_vm1, %vm126_vm0  ;;  %vm1294_vm1 = vcmp.lt.s32.totalorder %v2296_v34, 10 }
  0x97   :  { %1435 = vmatmul.msk.bf16.vlgmr.msra.gmra.mxu1 %vm1434_vm2, %v2206_v36  ;;  %v1710_v36 = vld [vmem:[#allocation8 + $0x1a0] sm:$0xf]  ;;  %881 = vmatpush.bf16.msrb.mxu3 %v1731_v35 }
  0x98   :  { %v1711_v43 = vor.u32 %v1971_v37, %v1710_v36  ;;  %842 = vmatpush.bf16.msrb.mxu0 %v1551_v3  ;;  %v1651_v37 = vor.u32 %v1953_v27, %v1648_v28  ;;  %v1944_v3 = vld [vmem:[#allocation8 + $0xd4] sm:$0xf0]  ;;  %v1702_v28 = vld [vmem:[#allocation8 + $0x188] sm:$0xf] }
  0x99   :  { %v1607_v6 = vor.u32 %v1944_v3, %v1606_v1  ;;  %v1936_v27 = vld [vmem:[#allocation8 + $0x94] sm:$0xf0]  ;;  %v1654_v1 = vld [vmem:[#allocation8 + $0x128] sm:$0xf]  ;;  %v1922_v3 = vld [vmem:[#allocation8 + $0x2c] sm:$0xf] }
  0x9a   :  { %854 = vmatpush.bf16.msrb.mxu1 %v1711_v43  ;;  %v1919_v43 = vld [vmem:[#allocation8 + $0xc] sm:$0xf0] }
  0x9b   :  { %882 = vmatpush.bf16.msrb.mxu3 %v1715_v48  ;;  %v1503_v45 = vor.u32 %v1919_v43, %v1502_v42  ;;  %v1504_v48 = vld [vmem:[#allocation8 + $0x10] sm:$0xf0]  ;;  %v1964_v43 = vld [vmem:[#allocation8 + $0x174] sm:$0xf0] }
  0x9c   :  { %843 = vmatpush.bf16.msrb.mxu0 %v1535_v16  ;;  %v1507_v50 = vor.u32 %v1917_v47, %v1504_v48  ;;  %v1718_v16 = vld [vmem:[#allocation8 + $0x1a8] sm:$0xf]  ;;  %v1962_v48 = vld [vmem:[#allocation8 + $0x16c] sm:$0xf] }
  0x9d   :  { %v1719_v21 = vor.u32 %v1972_v18, %v1718_v16  ;;  %v1512_v16 = vld [vmem:[#allocation8 + $0x18] sm:$0xf0] }
  0x9e   :  { %855 = vmatpush.bf16.msrb.mxu1 %v1695_v55  ;;  %v1948_v55 = vld [vmem:[#allocation8 + $0xf4] sm:$0xf0]  ;;  %873 = vmatpush.bf16.msrb.mxu2 %v1507_v50  ;;  %v1542_v50 = vld [vmem:[#allocation8 + $0x48] sm:$0xf]  ;;  %v1640_v18 = vld [vmem:[#allocation8 + $0x118] sm:$0xf0] }
  0x9f   :  { %883 = vmatpush.bf16.msrb.mxu3 %v1699_v60  ;;  %v1623_v57 = vor.u32 %v1948_v55, %v1622_v54  ;;  %v1624_v60 = vld [vmem:[#allocation8 + $0xf8] sm:$0xf0]  ;;  %v1960_v54 = vld [vmem:[#allocation8 + $0x154] sm:$0xf0]  ;;  %v1543_v55 = vor.u32 %v1928_v52, %v1542_v50  ;;  %v1985_v50 = vld [vmem:[#allocation10 + $0x20] sm:$0xff] }
  0xa0   :  { %844 = vmatpush.bf16.msrb.mxu0 %v1519_v29  ;;  %v1627_v62 = vor.u32 %v1946_v59, %v1624_v60  ;;  %v1575_v29 = vor.u32 %v1936_v27, %v1574_v26  ;;  %v1984_v52 = vld [vmem:[#allocation10 + $0x18] sm:$0xff] }
  0xa2   :  { %856 = vmatpush.bf16.msrb.mxu1 %v1679_v5  ;;  %v1976_v5 = vld [vmem:[#allocation8 + $0x1d4] sm:$0xf0] }
  0xa3   :  { %884 = vmatpush.bf16.msrb.mxu3 %v1683_v10  ;;  %v1974_v10 = vld [vmem:[#allocation8 + $0x1cc] sm:$0xf] }
  0xa4   :  { %845 = vmatpush.bf16.msrb.mxu0 %v1503_v45  ;;  %v1739_v13 = vor.u32 %v1974_v10, %v1736_v12  ;;  %v1560_v45 = vld [vmem:[#allocation8 + $0x78] sm:$0xf0]  ;;  %v1510_v10 = vld [vmem:[#allocation8 + $0x8] sm:$0xf] }
  0xa5   :  { %v1563_v47 = vor.u32 %v1930_v44, %v1560_v45  ;;  %v1638_v12 = vld [vmem:[#allocation8 + $0x108] sm:$0xf]  ;;  %v1988_v45 = vld [vmem:[#allocation10 + $0x38] sm:$0xff] }
  0xa6   :  { %857 = vmatpush.bf16.msrb.mxu1 %v1663_v17  ;;  %v1591_v17 = vor.u32 %v1940_v15, %v1590_v14  ;;  %v1952_v14 = vld [vmem:[#allocation8 + $0x114] sm:$0xf0]  ;;  %v1918_v15 = vld [vmem:[#allocation8 + $0xc] sm:$0xf] }
  0xa7   :  { %885 = vmatpush.bf16.msrb.mxu3 %v1667_v23  ;;  %v1970_v23 = vld [vmem:[#allocation8 + $0x1ac] sm:$0xf] }
  0xa8   :  { %894 = vmatpush.bf16.msra.mxu0 %v1623_v57  ;;  %v1723_v25 = vor.u32 %v1970_v23, %v1720_v24  ;;  %v1544_v57 = vld [vmem:[#allocation8 + $0x58] sm:$0xf0]  ;;  %v316_v23 = vld [vmem:[%s2327_s5] sm:$0x3] }
  0xa9   :  { %v1547_v60 = vor.u32 %v1926_v56, %v1544_v57  ;;  %v318_v26 = vperm.slane %v316_v23, 0  ;;  %v319_v27 = vperm.slane %v316_v23, 1  ;;  %v2003_v56 = vld [vmem:[#allocation10 + $0xb0] sm:$0xff]  ;;  %v1992_v57 = vld [vmem:[#allocation10 + $0x58] sm:$0xff] }
  0xaa   :  { %858 = vmatpush.bf16.msrb.mxu1 %v1647_v32  ;;  %v1576_v32 = vld [vmem:[#allocation8 + $0x98] sm:$0xf0] }
  0xab   :  { %886 = vmatpush.bf16.msrb.mxu3 %v1651_v37  ;;  %v1704_v37 = vld [vmem:[#allocation8 + $0x198] sm:$0xf0] }
  0xac   :  { %895 = vmatpush.bf16.msra.mxu0 %v1607_v6  ;;  %v1656_v6 = vld [vmem:[#allocation8 + $0x138] sm:$0xf0] }
  0xae   :  { %859 = vmatpush.bf16.msrb.mxu1 %v1631_v49  ;;  %v1688_v49 = vld [vmem:[#allocation8 + $0x178] sm:$0xf0] }
  0xaf   :  { %887 = vmatpush.bf16.msrb.mxu3 %v1635_v53  ;;  %v1691_v51 = vor.u32 %v1962_v48, %v1688_v49  ;;  %v1670_v53 = vld [vmem:[#allocation8 + $0x148] sm:$0xf]  ;;  %v1995_v48 = vld [vmem:[#allocation10 + $0x70] sm:$0xff] }
  0xb0   :  { %896 = vmatpush.bf16.msra.mxu0 %v1591_v17  ;;  %v1671_v59 = vor.u32 %v1960_v54, %v1670_v53  ;;  %v1950_v17 = vld [vmem:[#allocation8 + $0x10c] sm:$0xf]  ;;  %v2004_v53 = vld [vmem:[#allocation10 + $0xb8] sm:$0xff]  ;;  %v1993_v54 = vld [vmem:[#allocation10 + $0x60] sm:$0xff] }
  0xb1   :  { %v1986_v49 = vld [vmem:[#allocation10 + $0x28] sm:$0xff] }
  0xb2   :  { %908 = vmatpush.bf16.msra.mxu1 %v1751_v61  ;;  %v1672_v61 = vld [vmem:[#allocation8 + $0x158] sm:$0xf0] }
  0xb4   :  { %897 = vmatpush.bf16.msra.mxu0 %v1575_v29 }
  0xb5   :  { %v226_v0 = vpop.f32.mrf.mxu0 }
  0xbd   :  { %v228_v30 = vpop.f32.mrf.mxu0 }
 0x114   :  { %v288_v4 = vpop.f32.mrf.mxu1 }
 0x115   :  { %v289_v22 = vadd.f32 %v288_v4, %v226_v0  ;;  %v1752_v0 = vld [vmem:[#allocation8 + $0x1f8] sm:$0xf0]  ;;  %v1734_v4 = vld [vmem:[#allocation8 + $0x1c8] sm:$0xf] }
 0x116   :  { %v1755_v2 = vor.u32 %v1978_v63, %v1752_v0  ;;  %v1735_v7 = vor.u32 %v1976_v5, %v1734_v4  ;;  %v1924_v63 = vld [vmem:[#allocation8 + $0x34] sm:$0xf0]  ;;  %v1675_v0 = vor.u32 %v1958_v58, %v1672_v61  ;;  %v1528_v4 = vld [vmem:[#allocation8 + $0x38] sm:$0xf0]  ;;  %v1954_v5 = vld [vmem:[#allocation8 + $0x12c] sm:$0xf] }
 0x117   :  { %v295_v35 = vmul.f32 0.2, %v289_v22  ;;  %vm293_vm3 = vcmp.gt.f32.partialorder %v289_v22, 0.0  ;;  %v1531_v9 = vor.u32 %v1922_v3, %v1528_v4  ;;  %v2012_v58 = vld [vmem:[#allocation10 + $0xf8] sm:$0xff]  ;;  %v1991_v61 = vld [vmem:[#allocation10 + $0x50] sm:$0xff]  ;;  %v1989_v4 = vld [vmem:[#allocation10 + $0x40] sm:$0xff] }
 0x118   :  { %909 = vmatpush.bf16.msra.mxu1 %v1735_v7  ;;  %v2000_v3 = vld [vmem:[#allocation10 + $0x98] sm:$0xff] }
 0x119   :  { %v297_v39 = vsel %vm293_vm3, %v289_v22, %v295_v35  ;;  %v1595_v22 = vor.u32 %v1938_v19, %v1592_v20  ;;  %v1639_v20 = vor.u32 %v1952_v14, %v1638_v12 }
 0x11c   :  { %v290_v31 = vpop.f32.mrf.mxu1  ;;  %910 = vmatpush.bf16.msra.mxu1 %v1719_v21  ;;  %v1515_v21 = vor.u32 %v1918_v15, %v1512_v16  ;;  %v2006_v15 = vld [vmem:[#allocation10 + $0xc8] sm:$0xff] }
 0x11d   :  { %v291_v36 = vadd.f32 %v290_v31, %v228_v30  ;;  %v1968_v30 = vld [vmem:[#allocation8 + $0x194] sm:$0xf0]  ;;  %v1934_v31 = vld [vmem:[#allocation8 + $0x8c] sm:$0xf] }
 0x11e   :  { %v1703_v33 = vor.u32 %v1968_v30, %v1702_v28  ;;  %v1579_v35 = vor.u32 %v1934_v31, %v1576_v32 }
 0x11f   :  { %v296_v38 = vmul.f32 0.2, %v291_v36  ;;  %vm294_vm4 = vcmp.gt.f32.partialorder %v291_v36, 0.0 }
 0x120   :  { %911 = vmatpush.bf16.msra.mxu1 %v1703_v33 }
 0x121   :  { %v298_v40 = vsel %vm294_vm4, %v291_v36, %v296_v38  ;;  %v1966_v36 = vld [vmem:[#allocation8 + $0x18c] sm:$0xf] }
 0x122   :  { %v299_v41 = vpack.c.bf16 %v298_v40, %v297_v39  ;;  %v1707_v38 = vor.u32 %v1966_v36, %v1704_v37  ;;  %v1558_v39 = vld [vmem:[#allocation8 + $0x68] sm:$0xf]  ;;  %v1932_v40 = vld [vmem:[#allocation8 + $0x74] sm:$0xf0] }
 0x123   :  { %v1559_v42 = vor.u32 %v1932_v40, %v1558_v39 }
 0x124   :  { %410 = vmatmul.bf16.vlgmr.msra.gmra.mxu2 %v299_v41  ;;  %424 = vmatmul.bf16.vlgmr.msra.gmra.mxu3 %v299_v41  ;;  %v1686_v41 = vld [vmem:[#allocation8 + $0x168] sm:$0xf] }
 0x125   :  { %922 = vmatpush.bf16.msra.mxu2 %v1627_v62  ;;  %936 = vmatpush.bf16.msra.mxu3 %v1755_v2  ;;  %v1687_v46 = vor.u32 %v1964_v43, %v1686_v41  ;;  %v1526_v62 = vld [vmem:[#allocation8 + $0x28] sm:$0xf]  ;;  %v1956_v2 = vld [vmem:[#allocation8 + $0x134] sm:$0xf0] }
 0x126   :  { %898 = vmatpush.bf16.msra.mxu0 %v1559_v42  ;;  %v1527_v7 = vor.u32 %v1924_v63, %v1526_v62  ;;  %v1655_v8 = vor.u32 %v1956_v2, %v1654_v1  ;;  %v2011_v62 = vld [vmem:[#allocation10 + $0xf0] sm:$0xff]  ;;  %v1981_v63 = vld [vmem:[#allocation10] sm:$0xff]  ;;  %v1990_v1 = vld [vmem:[#allocation10 + $0x48] sm:$0xff] }
 0x127   :  { %912 = vmatpush.bf16.msra.mxu1 %v1687_v46  ;;  %v1996_v46 = vld [vmem:[#allocation10 + $0x78] sm:$0xff]  ;;  %v2010_v2 = vld [vmem:[#allocation10 + $0xe8] sm:$0xff] }
 0x129   :  { %923 = vmatpush.bf16.msra.mxu2 %v1611_v11  ;;  %937 = vmatpush.bf16.msra.mxu3 %v1739_v13  ;;  %v1920_v11 = vld [vmem:[#allocation8 + $0x14] sm:$0xf0]  ;;  %v1659_v13 = vor.u32 %v1954_v5, %v1656_v6  ;;  %v2009_v5 = vld [vmem:[#allocation10 + $0xe0] sm:$0xff]  ;;  %v1999_v6 = vld [vmem:[#allocation10 + $0x90] sm:$0xff] }
 0x12a   :  { %899 = vmatpush.bf16.msra.mxu0 %v1543_v55  ;;  %v1511_v19 = vor.u32 %v1920_v11, %v1510_v10  ;;  %v1983_v55 = vld [vmem:[#allocation10 + $0x10] sm:$0xff]  ;;  %v1997_v11 = vld [vmem:[#allocation10 + $0x80] sm:$0xff] }
 0x12b   :  { %913 = vmatpush.bf16.msra.mxu1 %v1671_v59  ;;  %v1982_v59 = vld [vmem:[#allocation10 + $0x8] sm:$0xff]  ;;  %v2007_v10 = vld [vmem:[#allocation10 + $0xd0] sm:$0xff] }
 0x12d   :  { %924 = vmatpush.bf16.msra.mxu2 %v1595_v22  ;;  %938 = vmatpush.bf16.msra.mxu3 %v1723_v25  ;;  %v1643_v22 = vor.u32 %v1950_v17, %v1640_v18  ;;  %v2005_v17 = vld [vmem:[#allocation10 + $0xc0] sm:$0xff] }
 0x12e   :  { %900 = vmatpush.bf16.msra.mxu0 %v1527_v7  ;;  %v2008_v7 = vld [vmem:[#allocation10 + $0xd8] sm:$0xff] }
 0x12f   :  { %914 = vmatpush.bf16.msra.mxu1 %v1655_v8  ;;  %v1998_v8 = vld [vmem:[#allocation10 + $0x88] sm:$0xff] }
 0x131   :  { %925 = vmatpush.bf16.msra.mxu2 %v1579_v35  ;;  %939 = vmatpush.bf16.msra.mxu3 %v1707_v38 }
 0x132   :  { %901 = vmatpush.bf16.msra.mxu0 %v1511_v19 }
 0x133   :  { %915 = vmatpush.bf16.msra.mxu1 %v1639_v20 }
 0x135   :  { %926 = vmatpush.bf16.msra.mxu2 %v1563_v47  ;;  %940 = vmatpush.bf16.msra.mxu3 %v1691_v51  ;;  %v1987_v47 = vld [vmem:[#allocation10 + $0x30] sm:$0xff]  ;;  %v1994_v51 = vld [vmem:[#allocation10 + $0x68] sm:$0xff] }
 0x139   :  { %927 = vmatpush.bf16.msra.mxu2 %v1547_v60  ;;  %941 = vmatpush.bf16.msra.mxu3 %v1675_v0  ;;  %v2002_v60 = vld [vmem:[#allocation10 + $0xa8] sm:$0xff]  ;;  %v2001_v0 = vld [vmem:[#allocation10 + $0xa0] sm:$0xff] }
 0x13d   :  { %928 = vmatpush.bf16.msra.mxu2 %v1531_v9  ;;  %942 = vmatpush.bf16.msra.mxu3 %v1659_v13  ;;  %v2306_v9 = vld [vmem:[%s2329_s7] sm:$0xf] }
 0x13e   :  { %v510_v12 = vperm.slane %v2306_v9, 0  ;;  %v511_v18 = vperm.slane %v2306_v9, 1 }
 0x141   :  { %929 = vmatpush.bf16.msra.mxu2 %v1515_v21  ;;  %943 = vmatpush.bf16.msra.mxu3 %v1643_v22 }
 0x1a7   :  { %v411_v24 = vpop.f32.mrf.mxu2  ;;  %v425_v25 = vpop.f32.mrf.mxu3 }
 0x1a8   :  { %v412_v28 = vadd.f32 %v411_v24, %v318_v26  ;;  %v426_v29 = vadd.f32 %v425_v25, %v319_v27 }
 0x1aa   :  { %v434_v32 = vmul.f32 0.2, %v412_v28  ;;  %v435_v33 = vmul.f32 0.2, %v426_v29  ;;  %vm430_vm5 = vcmp.gt.f32.partialorder %v412_v28, 0.0  ;;  %vm431_vm6 = vcmp.gt.f32.partialorder %v426_v29, 0.0 }
 0x1ac   :  { %v438_v39 = vsel %vm430_vm5, %v412_v28, %v434_v32  ;;  %v439_v40 = vsel %vm431_vm6, %v426_v29, %v435_v33 }
 0x1af   :  { %v413_v30 = vpop.f32.mrf.mxu2  ;;  %v427_v31 = vpop.f32.mrf.mxu3 }
 0x1b0   :  { %v414_v35 = vadd.f32 %v413_v30, %v318_v26  ;;  %v428_v36 = vadd.f32 %v427_v31, %v319_v27 }
 0x1b2   :  { %vm432_vm7 = vcmp.gt.f32.partialorder %v414_v35, 0.0  ;;  %v436_v37 = vmul.f32 0.2, %v414_v35  ;;  %vm433_vm8 = vcmp.gt.f32.partialorder %v428_v36, 0.0  ;;  %v437_v38 = vmul.f32 0.2, %v428_v36 }
 0x1b4   :  { %v440_v41 = vsel %vm432_vm7, %v414_v35, %v436_v37  ;;  %v441_v42 = vsel %vm433_vm8, %v428_v36, %v437_v38  ;;  %v512_v35 = vperm.slane %v2306_v9, 2 }
 0x1b5   :  { %v442_v43 = vpack.c.bf16 %v440_v41, %v438_v39  ;;  %v443_v44 = vpack.c.bf16 %v441_v42, %v439_v40 }
 0x1b7   :  { %846 = vmatmul.bf16.vlgmr.msrb.gmra.mxu0 %v442_v43  ;;  %860 = vmatmul.bf16.vlgmr.msrb.gmra.mxu1 %v443_v44 }
 0x1b8   :  { %874 = vmatmul.bf16.vlgmr.msrb.gmra.mxu2 %v442_v43  ;;  %888 = vmatmul.bf16.vlgmr.msrb.gmra.mxu3 %v443_v44 }
 0x1b9   :  { %1238 = vmatpush.bf16.msrb.mxu0 %v1988_v45  ;;  %1252 = vmatpush.bf16.msrb.mxu1 %v1996_v46  ;;  %v513_v46 = vperm.slane %v2306_v9, 3 }
 0x1ba   :  { %1266 = vmatpush.bf16.msrb.mxu2 %v2004_v53  ;;  %1280 = vmatpush.bf16.msrb.mxu3 %v2012_v58 }
 0x1bd   :  { %1239 = vmatpush.bf16.msrb.mxu0 %v1987_v47  ;;  %1253 = vmatpush.bf16.msrb.mxu1 %v1995_v48 }
 0x1be   :  { %1267 = vmatpush.bf16.msrb.mxu2 %v2003_v56  ;;  %1281 = vmatpush.bf16.msrb.mxu3 %v2011_v62 }
 0x1c1   :  { %1240 = vmatpush.bf16.msrb.mxu0 %v1986_v49  ;;  %1254 = vmatpush.bf16.msrb.mxu1 %v1994_v51 }
 0x1c2   :  { %1268 = vmatpush.bf16.msrb.mxu2 %v2002_v60  ;;  %1282 = vmatpush.bf16.msrb.mxu3 %v2010_v2 }
 0x1c5   :  { %1241 = vmatpush.bf16.msrb.mxu0 %v1985_v50  ;;  %1255 = vmatpush.bf16.msrb.mxu1 %v1993_v54 }
 0x1c6   :  { %1269 = vmatpush.bf16.msrb.mxu2 %v2001_v0  ;;  %1283 = vmatpush.bf16.msrb.mxu3 %v2009_v5 }
 0x1c7   :  { %902 = vmatmul.bf16.vlgmr.msra.gmra.mxu0 %v442_v43  ;;  %916 = vmatmul.bf16.vlgmr.msra.gmra.mxu1 %v443_v44 }
 0x1c8   :  { %930 = vmatmul.bf16.vlgmr.msra.gmra.mxu2 %v442_v43  ;;  %944 = vmatmul.bf16.vlgmr.msra.gmra.mxu3 %v443_v44 }
 0x1c9   :  { %1242 = vmatpush.bf16.msrb.mxu0 %v1984_v52  ;;  %1256 = vmatpush.bf16.msrb.mxu1 %v1992_v57 }
 0x1ca   :  { %1270 = vmatpush.bf16.msrb.mxu2 %v2000_v3  ;;  %1284 = vmatpush.bf16.msrb.mxu3 %v2008_v7 }
 0x1cd   :  { %1243 = vmatpush.bf16.msrb.mxu0 %v1983_v55  ;;  %1257 = vmatpush.bf16.msrb.mxu1 %v1991_v61 }
 0x1ce   :  { %1271 = vmatpush.bf16.msrb.mxu2 %v1999_v6  ;;  %1285 = vmatpush.bf16.msrb.mxu3 %v2007_v10 }
 0x1d1   :  { %1244 = vmatpush.bf16.msrb.mxu0 %v1982_v59  ;;  %1258 = vmatpush.bf16.msrb.mxu1 %v1990_v1 }
 0x1d2   :  { %1272 = vmatpush.bf16.msrb.mxu2 %v1998_v8  ;;  %1286 = vmatpush.bf16.msrb.mxu3 %v2006_v15  ;;  %v2033_v8 = vld [vmem:[%s2331_s9] ss:$0 sm:$0xff]  ;;  %s2207_s9 = smov [#allocation11]  }
 0x1d3   :  { %s1349_s28 = sshll.u32 %s2207_s9, 4  ;;  %s1350_s28 = int_to_ptr.vmem [resolvable:$true] %s1349_s28 }
 0x1d5   :  { %1245 = vmatpush.bf16.msrb.mxu0 %v1981_v63  ;;  %1259 = vmatpush.bf16.msrb.mxu1 %v1989_v4 }
 0x1d6   :  { %1273 = vmatpush.bf16.msrb.mxu2 %v1997_v11  ;;  %1287 = vmatpush.bf16.msrb.mxu3 %v2005_v17 }
 0x234   :  { %v847_v13 = vpop.f32.mrf.mxu0  ;;  %v861_v14 = vpop.f32.mrf.mxu1 }
 0x235   :  { %v848_v16 = vadd.f32 %v847_v13, %v510_v12 }
 0x237   :  { %v862_v19 = vadd.f32 %v861_v14, %v848_v16 }
 0x239   :  { %v958_v26 = vmul.f32 0.2, %v862_v19  ;;  %vm950_vm9 = vcmp.gt.f32.partialorder %v862_v19, 0.0 }
 0x23b   :  { %v875_v20 = vpop.f32.mrf.mxu2  ;;  %v889_v21 = vpop.f32.mrf.mxu3  ;;  %v966_v30 = vsel %vm950_vm9, %v862_v19, %v958_v26 }
 0x23c   :  { %v849_v22 = vpop.f32.mrf.mxu0  ;;  %v863_v23 = vpop.f32.mrf.mxu1  ;;  %v876_v25 = vadd.f32 %v875_v20, %v511_v18 }
 0x23d   :  { %v850_v24 = vadd.f32 %v849_v22, %v510_v12 }
 0x23e   :  { %v890_v29 = vadd.f32 %v889_v21, %v876_v25 }
 0x23f   :  { %v864_v27 = vadd.f32 %v863_v23, %v850_v24 }
 0x240   :  { %v959_v40 = vmul.f32 0.2, %v890_v29  ;;  %vm951_vm11 = vcmp.gt.f32.partialorder %v890_v29, 0.0 }
 0x241   :  { %vm954_vm10 = vcmp.gt.f32.partialorder %v864_v27, 0.0  ;;  %v962_v28 = vmul.f32 0.2, %v864_v27 }
 0x242   :  { %v967_v44 = vsel %vm951_vm11, %v890_v29, %v959_v40 }
 0x243   :  { %v970_v31 = vsel %vm954_vm10, %v864_v27, %v962_v28  ;;  %v877_v32 = vpop.f32.mrf.mxu2  ;;  %v891_v33 = vpop.f32.mrf.mxu3 }
 0x244   :  { %v974_v36 = vpack.c.bf16 %v970_v31, %v966_v30  ;;  %v878_v37 = vadd.f32 %v877_v32, %v511_v18  ;;  %v903_v38 = vpop.f32.mrf.mxu0  ;;  %v917_v39 = vpop.f32.mrf.mxu1 }
 0x245   :  { %v904_v42 = vadd.f32 %v903_v38, %v512_v35 }
 0x246   :  { %v892_v41 = vadd.f32 %v891_v33, %v878_v37  ;;  %1246 = vmatmul.bf16.vlgmr.msrb.gmra.mxu0 %v974_v36 }
 0x247   :  { %v918_v48 = vadd.f32 %v917_v39, %v904_v42 }
 0x248   :  { %vm955_vm12 = vcmp.gt.f32.partialorder %v892_v41, 0.0  ;;  %v963_v43 = vmul.f32 0.2, %v892_v41 }
 0x249   :  { %v960_v55 = vmul.f32 0.2, %v918_v48  ;;  %vm952_vm13 = vcmp.gt.f32.partialorder %v918_v48, 0.0 }
 0x24a   :  { %v971_v45 = vsel %vm955_vm12, %v892_v41, %v963_v43 }
 0x24b   :  { %v975_v47 = vpack.c.bf16 %v971_v45, %v967_v44  ;;  %v931_v49 = vpop.f32.mrf.mxu2  ;;  %v945_v50 = vpop.f32.mrf.mxu3  ;;  %v968_v59 = vsel %vm952_vm13, %v918_v48, %v960_v55 }
 0x24c   :  { %v905_v51 = vpop.f32.mrf.mxu0  ;;  %v932_v53 = vadd.f32 %v931_v49, %v513_v46  ;;  %v919_v54 = vpop.f32.mrf.mxu1 }
 0x24d   :  { %v906_v52 = vadd.f32 %v905_v51, %v512_v35  ;;  %1260 = vmatmul.bf16.vlgmr.msrb.gmra.mxu1 %v975_v47 }
 0x24e   :  { %v946_v58 = vadd.f32 %v945_v50, %v932_v53 }
 0x24f   :  { %v920_v56 = vadd.f32 %v919_v54, %v906_v52 }
 0x250   :  { %v961_v1 = vmul.f32 0.2, %v946_v58  ;;  %vm953_vm15 = vcmp.gt.f32.partialorder %v946_v58, 0.0 }
 0x251   :  { %vm956_vm14 = vcmp.gt.f32.partialorder %v920_v56, 0.0  ;;  %v964_v57 = vmul.f32 0.2, %v920_v56 }
 0x252   :  { %v969_v4 = vsel %vm953_vm15, %v946_v58, %v961_v1 }
 0x253   :  { %v972_v60 = vsel %vm956_vm14, %v920_v56, %v964_v57  ;;  %v933_v61 = vpop.f32.mrf.mxu2  ;;  %v947_v0 = vpop.f32.mrf.mxu3 }
 0x254   :  { %v976_v62 = vpack.c.bf16 %v972_v60, %v968_v59  ;;  %v934_v63 = vadd.f32 %v933_v61, %v513_v46 }
 0x256   :  { %v948_v2 = vadd.f32 %v947_v0, %v934_v63  ;;  %1274 = vmatmul.bf16.vlgmr.msrb.gmra.mxu2 %v976_v62 }
 0x258   :  { %vm957_vm0 = vcmp.gt.f32.partialorder %v948_v2, 0.0  ;;  %v965_v3 = vmul.f32 0.2, %v948_v2 }
 0x25a   :  { %v973_v5 = vsel %vm957_vm0, %v948_v2, %v965_v3 }
 0x25b   :  { %v977_v6 = vpack.c.bf16 %v973_v5, %v969_v4 }
 0x25d   :  { %1288 = vmatmul.bf16.vlgmr.msrb.gmra.mxu3 %v977_v6 }
 0x2c3   :  { %v1247_v7 = vpop.f32.mrf.mxu0 }
 0x2c4   :  { %v1248_v11 = vadd.f32 %v2033_v8, %v1247_v7 }
 0x2ca   :  { %v1261_v9 = vpop.f32.mrf.mxu1 }
 0x2cb   :  { %v1262_v12 = vadd.f32 %v1261_v9, %v1248_v11  ;;  %v1249_v14 = vpop.f32.mrf.mxu0 }
 0x2cc   :  { %v1250_v18 = vadd.f32 %v2033_v8, %v1249_v14 }
 0x2d2   :  { %v1263_v17 = vpop.f32.mrf.mxu1 }
 0x2d3   :  { %v1264_v21 = vadd.f32 %v1263_v17, %v1250_v18 }
 0x2d9   :  { %v1275_v10 = vpop.f32.mrf.mxu2 }
 0x2da   :  { %v1276_v13 = vadd.f32 %v1275_v10, %v1262_v12 }
 0x2e0   :  { %v1289_v15 = vpop.f32.mrf.mxu3 }
 0x2e1   :  { %v1290_v16 = vadd.f32 %v1289_v15, %v1276_v13  ;;  %v1277_v20 = vpop.f32.mrf.mxu2 }
 0x2e2   :  { %v1278_v22 = vadd.f32 %v1277_v20, %v1264_v21 }
 0x2e3   :  { %v1295_v19 = vsel %vm1294_vm1, %v1290_v16, -1e+30 }
 0x2e4   :  { %1297 = vmax.xlane.f32.xlu1 %v1295_v19 }
 0x2e8   :  { %v1291_v23 = vpop.f32.mrf.mxu3 }
 0x2e9   :  { %v1292_v24 = vadd.f32 %v1291_v23, %v1278_v22 }
 0x2eb   :  { %v1296_v25 = vsel %vm1294_vm1, %v1292_v24, -1e+30 }
 0x2ec   :  { %1299 = vmax.xlane.f32.xlu1 %v1296_v25 }
 0x357   :  { %v1298_v26 = vpop.xlane.xlu1 %1297 }
 0x358   :  { %v1301_v27 = vsub.f32 %v1295_v19, %v1298_v26 }
 0x35a   :  { %v1303_v28 = vmul.f32 1.442695, %v1301_v27 }
 0x35c   :  { %2034 = vpow2.f32 %v1303_v28 }
 0x35f   :  { %v1300_v29 = vpop.xlane.xlu1 %1299 }
 0x360   :  { %v1302_v30 = vsub.f32 %v1296_v25, %v1300_v29 }
 0x362   :  { %v2035_v31 = vpop.eup %2034  ;;  %v1305_v34 = vmul.f32 1.442695, %v1302_v30 }
 0x363   :  { %1307 = vadd.xlane.f32.xlu2 %v2035_v31 }
 0x364   :  { %2036 = vpow2.f32 %v1305_v34 }
 0x36a   :  { %v2037_v32 = vpop.eup %2036 }
 0x36b   :  { %1309 = vadd.xlane.f32.xlu2 %v2037_v32 }
 0x3d6   :  { %v1308_v33 = vpop.xlane.xlu2 %1307 }
 0x3d7   :  { %2038 = vrcp.f32 %v1308_v33  ;;  %v1322_v43 = vand.u32 2147483648, %v1308_v33  ;;  %vm1316_vm3 = vweird.f32 %v1308_v33  ;;  %v1320_v44 = vand.u32 2147483647, %v1308_v33 }
 0x3d9   :  { %v1323_v50 = vor.u32 1.1754944e-38, %v1322_v43  ;;  %vm1321_vm6 = vcmp.eq.f32.partialorder %v1320_v44, 8.507059e+37 }
 0x3dd   :  { %v2039_v35 = vpop.eup %2038 }
 0x3de   :  { %v1312_v36 = vmul.f32 %v2039_v35, %v1308_v33  ;;  %v1310_v37 = vpop.xlane.xlu2 %1309  ;;  %vm1317_vm2 = vweird.f32 %v2039_v35 }
 0x3df   :  { %2040 = vrcp.f32 %v1310_v37  ;;  %vm1318_vm4 = vmor %vm1316_vm3, %vm1317_vm2  ;;  %v1336_v46 = vand.u32 2147483648, %v1310_v37  ;;  %v1334_v48 = vand.u32 2147483647, %v1310_v37  ;;  %vm1330_vm7 = vweird.f32 %v1310_v37 }
 0x3e0   :  { %v1313_v38 = vsub.f32 1.0, %v1312_v36 }
 0x3e1   :  { %v1337_v52 = vor.u32 1.1754944e-38, %v1336_v46  ;;  %vm1335_vm9 = vcmp.eq.f32.partialorder %v1334_v48, 8.507059e+37 }
 0x3e2   :  { %v1314_v39 = vmul.f32 %v2039_v35, %v1313_v38 }
 0x3e4   :  { %v1315_v41 = vadd.f32 %v2039_v35, %v1314_v39 }
 0x3e5   :  { %v2041_v40 = vpop.eup %2040 }
 0x3e6   :  { %v1326_v42 = vmul.f32 %v2041_v40, %v1310_v37  ;;  %vm1331_vm5 = vweird.f32 %v2041_v40  ;;  %v1319_v49 = vsel %vm1318_vm4, %v2039_v35, %v1315_v41 }
 0x3e7   :  { %vm1332_vm8 = vmor %vm1330_vm7, %vm1331_vm5  ;;  %v1324_v53 = vsel %vm1321_vm6, %v1323_v50, %v1319_v49 }
 0x3e8   :  { %v1327_v45 = vsub.f32 1.0, %v1326_v42  ;;  %v1339_v56 = vmul.f32 %v2035_v31, %v1324_v53 }
 0x3ea   :  { %v1328_v47 = vmul.f32 %v2041_v40, %v1327_v45 }
 0x3ec   :  { %v1329_v51 = vadd.f32 %v2041_v40, %v1328_v47 }
 0x3ee   :  { %v1333_v54 = vsel %vm1332_vm8, %v2041_v40, %v1329_v51 }
 0x3ef   :  { %v1338_v55 = vsel %vm1335_vm9, %v1337_v52, %v1333_v54 }
 0x3f0   :  { %v1340_v57 = vmul.f32 %v2037_v32, %v1338_v55 }
 0x3f2   :  { %v2016_v58 = vpack.c.bf16 %v1340_v57, %v1339_v56 }
 0x3f4   :  { %2017 = vst [vmem:[#allocation11] sm:$0xff] %v2016_v58  }
 0x3f5   :  { %1357 = dma.vmem_to_hbm [thread:$0]  %s1350_s28, 128, %s1352_s30, [#allocation4], %s2195_s21, %s2195_s21, %s2196_s22  }
 0x3f6   :  { %2192 = dma.done.wait [#allocation4], 128  }
 0x3f7   :  { %2193 = vsyncadd [#allocation4], 4294967168 }
 0x3f8   :  { %1362 = vsyncpa [#allocation3], 1 }
 0x3f9   :  { %1363 = vsyncpa [#allocation6], 1 }
 0x3fa   :  { %1364 = vsyncpa [#allocation9], 1 }
 0x3fb   :  { %1365 = vsyncpa [#allocation4], 1 }

</bundles_post_ra>
